<compile_context>
chip_gen: v7x
topology: tpu7x:2x2x1
jax: 0.10.0
libtpu: 0.0.40
codegen_flags: <defaults>
</compile_context>

<pallas_src>
import jax
import jax.numpy as jnp
from jax.experimental import pallas as pl
from jax.experimental.pallas import tpu as pltpu


# ----------------------------------------------------------------------------- kernels
def _pfn_concat_kernel(x_ref, w_ref, b_ref, out_ref):
    """Non-last-layer: out[..., :U] = relu(BN(x@W)); out[..., U:] = max over T (bcast)."""
    _, tp, t, c = x_ref.shape
    u = w_ref.shape[1]
    # (TP, T, C) -> (TP*T, C): leading-dim merge, minor dim unchanged (layout-free
    # when T % 8 == 0, which covers the common T=8/32 cases).
    x2d = x_ref[0].reshape(tp * t, c)
    z = jnp.dot(x2d, w_ref[...], preferred_element_type=jnp.float32)      # MXU, f32 acc
    y = jnp.maximum(z + b_ref[...], 0.0)                                  # VPU, f32
    y3 = y.reshape(tp, t, u)                                              # (TP, T, U)
    y_max = jnp.max(y3, axis=1, keepdims=True)                            # (TP, 1, U)
    # Direct slice stores: no (TP, T, 2U) concat temporary, cast only at the store.
    out_ref[0, :, :, :u] = y3.astype(out_ref.dtype)
    out_ref[0, :, :, u:] = jnp.broadcast_to(y_max, (tp, t, u)).astype(out_ref.dtype)


def _pfn_last_kernel(x_ref, w_ref, b_ref, out_ref):
    """Last layer: out block is (1, U, TP) -- lane-dense along the pillar axis."""
    _, tp, t, c = x_ref.shape
    u = w_ref.shape[1]
    x2d = x_ref[0].reshape(tp * t, c)
    z = jnp.dot(x2d, w_ref[...], preferred_element_type=jnp.float32)      # (TP*T, U)
    y = jnp.maximum(z + b_ref[...], 0.0)
    y_max = jnp.max(y.reshape(tp, t, u), axis=1)                          # (TP, U) f32
    # Small XLU transpose so the store minor dim is TP (>=128 lanes, unmasked vst).
    out_ref[0] = jnp.transpose(y_max, (1, 0)).astype(out_ref.dtype)       # (U, TP)


# ----------------------------------------------------------------------------- helpers
def _round_up(v, m):
    return -(-v // m) * m


def _choose_tile_p(P, n_batch, tile_p):
    """Pillar-axis tile.

    Must be a multiple of 128 (the last-layer output puts TP in the lane dim) unless
    it covers all of P.  Prefers an even total grid-step count for the v7x megacore,
    spending at most one 128-row decrement to get it.
    """
    tile_p = int(tile_p)
    if P <= max(tile_p, 128):
        return P
    base = max(128, (tile_p // 128) * 128)
    for cand in (base, base - 128):
        if cand >= 128 and (n_batch * pl.cdiv(P, cand)) % 2 == 0:
            return cand
    return base


def _vmem_budget_bytes(tp, T, C, U, last_layer, compute_dtype, out_dtype):
    """Honest (lane-padded) VMEM budget: double-buffered blocks + f32 temporaries."""
    cb = jnp.dtype(compute_dtype).itemsize
    ob = jnp.dtype(out_dtype).itemsize
    in_blk = tp * _round_up(T, 8) * 128 * cb                      # C lane-pads to 128
    if last_layer:
        out_blk = _round_up(U, 8) * _round_up(tp, 128) * ob
    else:
        out_blk = tp * _round_up(T, 8) * _round_up(2 * U, 128) * ob
    w_blk = _round_up(C, 8) * _round_up(U, 128) * cb + 8 * _round_up(U, 128) * 4
    temps = tp * _round_up(T, 8) * _round_up(U, 128) * 4 * 2      # z / y f32 values
    return 2 * (in_blk + out_blk) + 2 * w_blk + temps + (4 << 20)


# ----------------------------------------------------------------------------- wrapper
def pfn_layer_forward(inputs, conv_w, bn_gamma, bn_beta, bn_mean, bn_var,
                      *, eps=1e-3, last_layer=False,
                      compute_dtype=jnp.float32, out_dtype=None,
                      tile_p=256, vmem_limit_bytes=None,
                      channels_last_input=False, channels_last_output=False):
    """PFNLayer forward.

    inputs: NCHW (N, C_in, P, T), or (N, P, T, C_in) if channels_last_input=True.
    conv_w: (U, C_in, 1, 1); bn_*: (U,).
    Returns NCHW (N, 2U, P, T) / (N, U, P, 1), or channels-last (N, P, T, 2U) for the
    concat branch when channels_last_output=True (the last-layer NCHW result is free).
    """
    if channels_last_input:
        N, P, T, C = inputs.shape
    else:
        N, C, P, T = inputs.shape
    U = conv_w.shape[0]
    if out_dtype is None:
        out_dtype = inputs.dtype
    if not last_layer and T != C:
        # Inherited PyTorch quirk: the concat branch only type-checks when
        # points-per-pillar (dim 3) == in_channels.
        raise ValueError(f"concat branch requires T == C_in (got T={T}, C_in={C})")

    # ---- parameter folding (plain JAX; negligible size) ------------------------
    scale = bn_gamma / jnp.sqrt(bn_var + eps)                               # (U,)
    bias = (bn_beta - bn_mean * scale).astype(jnp.float32)[None, :]         # (1, U) f32
    w = (jnp.transpose(conv_w[:, :, 0, 0], (1, 0)) * scale[None, :])        # (C, U)
    w = w.astype(compute_dtype)  # NOTE: BN scale folded before the (optional) bf16 cast.

    # ---- pillar-axis tiling -----------------------------------------------------
    tp = _choose_tile_p(P, N, tile_p)
    grid = (N, pl.cdiv(P, tp))

    if vmem_limit_bytes is None:
        budget = _vmem_budget_bytes(tp, T, C, U, last_layer, compute_dtype, out_dtype)
        vmem_limit_bytes = min(96 << 20, max(32 << 20, int(budget)))

    # Channels-last + cast in ONE fused XLA pass (skipped entirely when the caller
    # already keeps the pipeline channels-last).
    if channels_last_input:
        x = inputs.astype(compute_dtype)                                    # (N, P, T, C)
    else:
        x = jnp.transpose(inputs, (0, 2, 3, 1)).astype(compute_dtype)       # (N, P, T, C)

    in_specs = [
        pl.BlockSpec((1, tp, T, C), lambda n, p: (n, p, 0, 0)),
        pl.BlockSpec((C, U), lambda n, p: (0, 0)),
        pl.BlockSpec((1, U), lambda n, p: (0, 0)),
    ]
    cparams = pltpu.CompilerParams(
        dimension_semantics=("parallel", "parallel"),
        vmem_limit_bytes=int(vmem_limit_bytes))

    in_bytes = (N * P * T * C * jnp.dtype(compute_dtype).itemsize
                + (C + 1) * U * jnp.dtype(compute_dtype).itemsize)
    flops = 2 * N * P * T * C * U

    if last_layer:
        out_bytes = N * U * P * jnp.dtype(out_dtype).itemsize
        y = pl.pallas_call(
            _pfn_last_kernel,
            out_shape=jax.ShapeDtypeStruct((N, U, P), out_dtype),
            grid=grid,
            in_specs=in_specs,
            out_specs=pl.BlockSpec((1, U, tp), lambda n, p: (n, 0, p)),
            compiler_params=cparams,
            cost_estimate=pl.CostEstimate(flops=flops, transcendentals=0,
                                          bytes_accessed=in_bytes + out_bytes),
        )(x, w, bias)
        # (N, U, P) -> NCHW (N, U, P, 1): free reshape, no transpose pass.
        return y[..., None]

    out_bytes = N * P * T * 2 * U * jnp.dtype(out_dtype).itemsize
    out = pl.pallas_call(
        _pfn_concat_kernel,
        out_shape=jax.ShapeDtypeStruct((N, P, T, 2 * U), out_dtype),
        grid=grid,
        in_specs=in_specs,
        out_specs=pl.BlockSpec((1, tp, T, 2 * U), lambda n, p: (n, p, 0, 0)),
        compiler_params=cparams,
        cost_estimate=pl.CostEstimate(flops=flops, transcendentals=0,
                                      bytes_accessed=in_bytes + out_bytes),
    )(x, w, bias)
    if channels_last_output:
        return out                                   # (N, P, T, 2U): zero extra passes
    # Strict NCHW module compatibility costs one transpose pass over the output.
    return jnp.transpose(out, (0, 3, 1, 2))          # (N, 2U, P, T)


# ----------------------------------------------------------------------------- reference
def _reference_forward(inputs, conv_w, bn_gamma, bn_beta, bn_mean, bn_var,
                       *, eps=1e-3, last_layer=False):
    """Pure-JAX reference mirroring the PyTorch module (eval-mode BN)."""
    x = jnp.einsum("ncpt,uc->nupt", inputs, conv_w[:, :, 0, 0])
    scale = bn_gamma / jnp.sqrt(bn_var + eps)
    x = x * scale[None, :, None, None] + (bn_beta - bn_mean * scale)[None, :, None, None]
    x = jnp.maximum(x, 0.0)
    x_max = jnp.max(x, axis=3, keepdims=True)
    if last_layer:
        return x_max
    x_repeat = jnp.tile(x_max, (1, 1, 1, inputs.shape[1]))
    return jnp.concatenate([x, x_repeat], axis=1)


if __name__ == "__main__":
    # Small shapes consistent with PFNLayer's forward.  The non-last-layer branch
    # only type-checks when T (points per pillar) == in_channels.
    N, C_in, P, T = 2, 8, 16, 8
    out_channels = 32          # module halves this when not last layer
    units = out_channels // 2  # = 16

    key = jax.random.PRNGKey(0)
    k_x, k_w, k_g, k_b, k_m, k_v, k_x2 = jax.random.split(key, 7)

    inputs = jax.random.normal(k_x, (N, C_in, P, T), dtype=jnp.float32)
    conv_w = 0.1 * jax.random.normal(k_w, (units, C_in, 1, 1), dtype=jnp.float32)
    bn_gamma = 1.0 + 0.05 * jax.random.normal(k_g, (units,), dtype=jnp.float32)
    bn_beta = 0.05 * jax.random.normal(k_b, (units,), dtype=jnp.float32)
    bn_mean = 0.05 * jax.random.normal(k_m, (units,), dtype=jnp.float32)
    bn_var = jax.random.uniform(k_v, (units,), minval=0.5, maxval=1.5, dtype=jnp.float32)

    ref = _reference_forward(inputs, conv_w, bn_gamma, bn_beta, bn_mean, bn_var,
                             last_layer=False)
    ref_last = _reference_forward(inputs, conv_w, bn_gamma, bn_beta, bn_mean, bn_var,
                                  last_layer=True)

    # ---- f32 NCHW path (matches PyTorch numerics tightly) -----------------------
    out = pfn_layer_forward(inputs, conv_w, bn_gamma, bn_beta, bn_mean, bn_var,
                            last_layer=False, compute_dtype=jnp.float32)
    out = jax.block_until_ready(out)
    assert out.shape == (N, 2 * units, P, T), out.shape
    assert jnp.allclose(out, ref, atol=1e-4, rtol=1e-4)

    out_last = pfn_layer_forward(inputs, conv_w, bn_gamma, bn_beta, bn_mean, bn_var,
                                 last_layer=True, compute_dtype=jnp.float32)
    out_last = jax.block_until_ready(out_last)
    assert out_last.shape == (N, units, P, 1), out_last.shape
    assert jnp.allclose(out_last, ref_last, atol=1e-4, rtol=1e-4)

    # ---- channels-last output (zero wrapper transpose) --------------------------
    out_cl = pfn_layer_forward(inputs, conv_w, bn_gamma, bn_beta, bn_mean, bn_var,
                               last_layer=False, compute_dtype=jnp.float32,
                               channels_last_output=True)
    out_cl = jax.block_until_ready(out_cl)
    assert out_cl.shape == (N, P, T, 2 * units), out_cl.shape
    assert jnp.allclose(out_cl, jnp.transpose(ref, (0, 2, 3, 1)), atol=1e-4, rtol=1e-4)

    # ---- bf16 MXU compute + bf16 output (perf mode; f32 acc, looser tolerance) --
    out_bf = pfn_layer_forward(inputs, conv_w, bn_gamma, bn_beta, bn_mean, bn_var,
                               last_layer=False, compute_dtype=jnp.bfloat16,
                               out_dtype=jnp.bfloat16)
    out_bf = jax.block_until_ready(out_bf)
    assert out_bf.shape == (N, 2 * units, P, T), out_bf.shape
    assert jnp.allclose(out_bf.astype(jnp.float32), ref, atol=3e-2, rtol=3e-2)

    out_bf_last = pfn_layer_forward(inputs, conv_w, bn_gamma, bn_beta, bn_mean, bn_var,
                                    last_layer=True, compute_dtype=jnp.bfloat16,
                                    out_dtype=jnp.bfloat16)
    out_bf_last = jax.block_until_ready(out_bf_last)
    assert out_bf_last.shape == (N, units, P, 1), out_bf_last.shape
    assert jnp.allclose(out_bf_last.astype(jnp.float32), ref_last, atol=3e-2, rtol=3e-2)

    # ---- non-divisible pillar count (partial last tile, masked edge stores) -----
    P2 = 160
    inputs2 = jax.random.normal(k_x2, (N, C_in, P2, T), dtype=jnp.float32)
    ref2 = _reference_forward(inputs2, conv_w, bn_gamma, bn_beta, bn_mean, bn_var,
                              last_layer=False)
    ref2_last = _reference_forward(inputs2, conv_w, bn_gamma, bn_beta, bn_mean, bn_var,
                                   last_layer=True)
    out2 = pfn_layer_forward(inputs2, conv_w, bn_gamma, bn_beta, bn_mean, bn_var,
                             last_layer=False, tile_p=128)
    out2_last = pfn_layer_forward(inputs2, conv_w, bn_gamma, bn_beta, bn_mean, bn_var,
                                  last_layer=True, tile_p=128)
    out2 = jax.block_until_ready(out2)
    out2_last = jax.block_until_ready(out2_last)
    assert out2.shape == (N, 2 * units, P2, T), out2.shape
    assert out2_last.shape == (N, units, P2, 1), out2_last.shape
    assert jnp.allclose(out2, ref2, atol=1e-4, rtol=1e-4)
    assert jnp.allclose(out2_last, ref2_last, atol=1e-4, rtol=1e-4)

    print("KERNEL_OK")
</pallas_src>

<mosaic_0001>
module attributes {stable_mosaic.version = 11 : i64} {
  func.func @_pfn_concat_kernel(%arg0: i32, %arg1: i32, %arg2: memref<1x16x8x8xf32, #tpu.memory_space<vmem>>, %arg3: memref<8x16xf32, #tpu.memory_space<vmem>>, %arg4: memref<1x16xf32, #tpu.memory_space<vmem>>, %arg5: memref<1x16x8x32xf32, #tpu.memory_space<vmem>>) attributes {dimension_semantics = [#tpu.dimension_semantics<parallel>, #tpu.dimension_semantics<parallel>], iteration_bounds = array<i64: 2, 1>, scalar_prefetch = 0 : i64, scratch_operands = 0 : i64, tpu.core_type = #tpu.core_type<tc>, window_params = [{transform_indices = @transform_0, window_bounds = array<i64: 1, 16, 8, 8>}, {pipeline_mode = #tpu.pipeline_mode<synchronous>, transform_indices = @transform_1, window_bounds = array<i64: 8, 16>}, {pipeline_mode = #tpu.pipeline_mode<synchronous>, transform_indices = @transform_2, window_bounds = array<i64: 1, 16>}, {transform_indices = @transform_3, window_bounds = array<i64: 1, 16, 8, 32>}]} {
    %c0 = arith.constant 0 : index
    %c0_0 = arith.constant 0 : index
    %c0_1 = arith.constant 0 : index
    %c0_2 = arith.constant 0 : index
    %0 = vector.load %arg2[%c0, %c0_0, %c0_1, %c0_2] : memref<1x16x8x8xf32, #tpu.memory_space<vmem>>, vector<1x16x8x8xf32>
    %1 = vector.shape_cast %0 : vector<1x16x8x8xf32> to vector<16x8x8xf32>
    %2 = vector.shape_cast %1 : vector<16x8x8xf32> to vector<128x8xf32>
    %c0_3 = arith.constant 0 : index
    %c0_4 = arith.constant 0 : index
    %3 = vector.load %arg3[%c0_3, %c0_4] : memref<8x16xf32, #tpu.memory_space<vmem>>, vector<8x16xf32>
    %cst = arith.constant dense<0.000000e+00> : vector<128x16xf32>
    %4 = tpu.matmul %2, %3, %cst {dimension_numbers = #tpu.dot_dimension_numbers<[1], [0], [0], [1], [0, 0, 1, 1], [], []>} : vector<128x8xf32>, vector<8x16xf32>, vector<128x16xf32> -> vector<128x16xf32>
    %c0_5 = arith.constant 0 : index
    %c0_6 = arith.constant 0 : index
    %5 = vector.load %arg4[%c0_5, %c0_6] : memref<1x16xf32, #tpu.memory_space<vmem>>, vector<1x16xf32>
    %6 = vector.broadcast %5 : vector<1x16xf32> to vector<128x16xf32>
    %7 = arith.addf %4, %6 : vector<128x16xf32>
    %cst_7 = arith.constant 0.000000e+00 : f32
    %8 = vector.broadcast %cst_7 : f32 to vector<128x16xf32>
    %9 = arith.maximumf %7, %8 : vector<128x16xf32>
    %10 = vector.shape_cast %9 : vector<128x16xf32> to vector<16x8x16xf32>
    %cst_8 = arith.constant dense<0xFF800000> : vector<16x16xf32>
    %11 = vector.multi_reduction <maximumf>, %10, %cst_8 [1] : vector<16x8x16xf32> to vector<16x16xf32>
    %12 = vector.shape_cast %11 : vector<16x16xf32> to vector<16x1x16xf32>
    %c0_9 = arith.constant 0 : index
    %c0_10 = arith.constant 0 : index
    %c0_11 = arith.constant 0 : index
    %c0_12 = arith.constant 0 : index
    %13 = vector.load %arg5[%c0_9, %c0_10, %c0_11, %c0_12] : memref<1x16x8x32xf32, #tpu.memory_space<vmem>>, vector<1x16x8x16xf32>
    %14 = vector.shape_cast %13 : vector<1x16x8x16xf32> to vector<16x8x16xf32>
    %15 = vector.shape_cast %10 : vector<16x8x16xf32> to vector<1x16x8x16xf32>
    tpu.vector_store %arg5[%c0_9, %c0_10, %c0_11, %c0_12], %15 {strides = array<i32>} : memref<1x16x8x32xf32, #tpu.memory_space<vmem>>, vector<1x16x8x16xf32>,
    %16 = vector.shape_cast %12 : vector<16x1x16xf32> to vector<16x1x16xf32>
    %17 = vector.broadcast %16 : vector<16x1x16xf32> to vector<16x8x16xf32>
    %c0_13 = arith.constant 0 : index
    %c0_14 = arith.constant 0 : index
    %c0_15 = arith.constant 0 : index
    %c16 = arith.constant 16 : index
    %18 = vector.load %arg5[%c0_13, %c0_14, %c0_15, %c16] : memref<1x16x8x32xf32, #tpu.memory_space<vmem>>, vector<1x16x8x16xf32>
    %19 = vector.shape_cast %18 : vector<1x16x8x16xf32> to vector<16x8x16xf32>
    %20 = vector.shape_cast %17 : vector<16x8x16xf32> to vector<1x16x8x16xf32>
    tpu.vector_store %arg5[%c0_13, %c0_14, %c0_15, %c16], %20 {strides = array<i32>} : memref<1x16x8x32xf32, #tpu.memory_space<vmem>>, vector<1x16x8x16xf32>,
    return
  }
  func.func @transform_0(%arg0: i32, %arg1: i32) -> (i32, i32, i32, i32) {
    %c0_i32 = arith.constant 0 : i32
    %c0_i32_0 = arith.constant 0 : i32
    %c0_i32_1 = arith.constant 0 : i32
    return %arg0, %arg1, %c0_i32, %c0_i32_0 : i32, i32, i32, i32
  }
  func.func @transform_1(%arg0: i32, %arg1: i32) -> (i32, i32) {
    %c0_i32 = arith.constant 0 : i32
    %c0_i32_0 = arith.constant 0 : i32
    %c0_i32_1 = arith.constant 0 : i32
    return %c0_i32, %c0_i32_0 : i32, i32
  }
  func.func @transform_2(%arg0: i32, %arg1: i32) -> (i32, i32) {
    %c0_i32 = arith.constant 0 : i32
    %c0_i32_0 = arith.constant 0 : i32
    %c0_i32_1 = arith.constant 0 : i32
    return %c0_i32, %c0_i32_0 : i32, i32
  }
  func.func @transform_3(%arg0: i32, %arg1: i32) -> (i32, i32, i32, i32) {
    %c0_i32 = arith.constant 0 : i32
    %c0_i32_0 = arith.constant 0 : i32
    %c0_i32_1 = arith.constant 0 : i32
    return %arg0, %arg1, %c0_i32, %c0_i32_0 : i32, i32, i32, i32
  }
}

</mosaic_0001>

<bundles_post_ra>
// kernel: tpu_custom_call.1
= control target key start
LH: loop header
LB: loop body
LE: loop exit
PB: predicated region body
PF: predicated region fallthrough
CT: control target
= control target key end

     0   :  { %8 = vsyncpa [#allocation3], 0  ;;  %s1240_s0 = inlined_call_operand.vmem [shape: f32[2,16,8,8], index: 0, kind: input, shape index: {}]   ;;  %s1241_s1 = inlined_call_operand.vmem [shape: f32[8,16], index: 1, kind: input, shape index: {}]   ;;  %s1242_s2 = inlined_call_operand.vmem [shape: f32[1,16], index: 2, kind: input, shape index: {}]   ;;  %s1243_s3 = inlined_call_operand.hbm [shape: f32[2,16,8,32], index: 3, kind: output, shape index: {}]  }
   0x1   :  { %10 = vsyncpa [#allocation3 + $0x1], 0  ;;  %s978_s12 = smov 0   ;;  %s980_s13 = smov 0  }
   0x2   :  { %s982_s14 = smov 0   ;;  %s984_s15 = smov 0  }
   0x3   :  { %s986_s16 = smov 0   ;;  %s988_s17 = smov 0  }
   0x4 LB: > { %s739_s18 = sadd.s32 4294967295, %s952_s17   ;;  %s740_s19 = sadd.s32 4294967294, %s952_s17   ;;  %s952_s17 = sphi %s988_s17, %s16_s17   ;;  %s948_s16 = sphi %s986_s16, %s1250_s16   ;;  %s944_s15 = sphi %s984_s15, %s1249_s15   ;;  %s940_s14 = sphi %s982_s14, %s1248_s14   ;;  %s936_s13 = sphi %s980_s13, %s1247_s13   ;;  %s932_s12 = sphi %s978_s12, %s1246_s12  }
   0x5   : > { %s28_s20 = sadd.s32 1, %s948_s16  ;;  %s107_s21 = sadd.s32 1, %s940_s14 }
   0x6   : > { %p30_p0 = scmp.ge.s32.totalorder %s28_s20, 2  ;;  %p117_p1 = scmp.ne.s32.totalorder %s940_s14, %s936_s13 }
   0x7   : > { %p118_p2 = scmp.eq.s32.totalorder %s739_s18, 1  ;;  %p123_p3 = scmp.ne.s32.totalorder %s936_s13, %s932_s12 }
   0x8   : > { %s1252_s20 = smov (%p30_p0, %s28_s20), 0  ;;  %p124_p5 = scmp.eq.s32.totalorder %s740_s19, 1 }
   0x9   : > { %p1018_p4 = por %p118_p2, %p117_p1  ;;  %s102_s23 = ssub.s32 %s948_s16, %s1252_s20 }
   0xa   : > { %p743_p6 = scmp.ge.s32.totalorder %s952_s17, 1  ;;  %p105_p7 = scmp.eq.s32.totalorder %s102_s23, 0 }
   0xb   : > { %p1025_p8 = por %p124_p5, %p123_p3  ;;  %p161_p9 = scmp.lt.s32.totalorder %s952_s17, 3 }
   0xc   : > { %s1031_s25 = scalar_select %p105_p7, %s940_s14, %s107_s21  }
   0xd   : > { %p162_p10 = pnand %p743_p6, %p161_p9 }
   0xe   : > { %v216_v0 = vld [vmem:[%s1241_s1] sm:$0xff] (!%p162_p10)  ;;  %p190_p11 = scmp.lt.s32.totalorder (!%p162_p10), %s944_s15, 1  ;;  %vm224_vm0 = vcmask (!%p162_p10), 64512   ;;  %s186_s6 = sand.u32 (!%p162_p10), 1, %s936_s13   ;;  %vm434_vm1 = vcmask (!%p162_p10), 130048   ;;  %vm627_vm2 = vcmask (!%p162_p10), 261248  }
   0xf   : > { %165 = sbr.rel (%p162_p10) target bundleno = 424 (0x1a8), region = 32  ;;  %788 = vmatprep.subr.mxu0 (!%p162_p10), %v216_v0  ;;  %814 = vmatprep.subr.mxu1 (!%p162_p10), %v216_v0  ;;  %v1061_v17 = vld [vmem:[%s1242_s2] ss:$0 sm:$0xff] (!%p162_p10)  ;;  %s744_s9 = sshll.u32 (!%p162_p10), %s186_s6, 7 }
  0x10   : > { %789 = vmatpush3.msra.mxu0 (!%p162_p10), %v216_v0  ;;  %815 = vmatpush3.msra.mxu1 (!%p162_p10), %v216_v0  ;;  %s1069_s10 = scalar_lea.vmem (!%p162_p10), [#allocation2], %s744_s9  ;;  %s954_s11 = smov (!%p162_p10), 16  }
  0x11   : > { %s770_s18 = sshll.u32 (!%p162_p10), %s944_s15, 11  ;;  %s660_s19 = sshll.u32 (!%p162_p10), %s1069_s10, 4  ;;  %s1186_s19 = int_to_ptr.vmem [resolvable:$true] %s660_s19 }
  0x12   : > { %s1184_s26 = scalar_lea.hbm (!%p162_p10), %s1243_s3, %s770_s18  ;;  %s874_s27 = scalar_lea.vmem (!%p162_p10), %s1186_s19, 2048 }
  0x13   : > { %p875_p12 = scmp.ne.s32.totalorder (!%p162_p10), %s1186_s19, %s874_s27 }
  0x15   : > { %p876_p13 = pnand (!%p162_p10), %p875_p12, %p1018_p4 }
  0x16   : > { %s191_s28 = scalar_select %p190_p11, %s944_s15, 1 }
  0x17   : > { %s1194_s15 = scalar_lea.sflag [#allocation3], %s186_s6  ;;  %p877_p0 = pneg %p876_p13 }
  0x18   : > { %s769_s29 = sshll.u32 %s191_s28, 7  ;;  %s955_s28 = smov [#allocation2]  }
  0x19   : > { %s197_s5 = scalar_lea.vmem %s1240_s0, %s769_s29  ;;  %s878_s29 = sshll.u32 %s955_s28, 4  ;;  %s879_s29 = int_to_ptr.vmem [resolvable:$false] %s878_s29 }
  0x1a   : > { %v200_v1 = vld [vmem:[%s197_s5] sm:$0xff]  ;;  %v201_v3 = vld [vmem:[%s197_s5 + $0x8] sm:$0xff]  ;;  %v202_v5 = vld [vmem:[%s197_s5 + $0x10] sm:$0xff]  ;;  %s880_s30 = scalar_lea.vmem %s879_s29, 4096  ;;  %p881_p1 = scmp.lt.s32.totalorder %s1186_s19, %s879_s29 }
  0x1b   : > { %v208_v2 = vld [vmem:[%s197_s5 + $0x40] sm:$0xff]  ;;  %790 = vmatprep.mubr.msk.f32.mxu0 %vm224_vm0, %v200_v1  ;;  %v209_v4 = vld [vmem:[%s197_s5 + $0x48] sm:$0xff]  ;;  %v210_v6 = vld [vmem:[%s197_s5 + $0x50] sm:$0xff]  ;;  %p882_p2 = scmp.lt.s32.totalorder %s880_s30, %s874_s27 }
  0x1c   : > { %802 = vmatprep.mubr.msk.f32.mxu1 %vm224_vm0, %v208_v2  ;;  %791 = vmatmul.mubr.msk.f32.vlgmr.msra.gmra.mrb[0].mxu0 %vm224_vm0, %v201_v3  ;;  %v203_v7 = vld [vmem:[%s197_s5 + $0x18] sm:$0xff]  ;;  %v204_v9 = vld [vmem:[%s197_s5 + $0x20] sm:$0xff]  ;;  %v205_v11 = vld [vmem:[%s197_s5 + $0x28] sm:$0xff] }
  0x1d   : > { %803 = vmatmul.mubr.msk.f32.vlgmr.msra.gmra.mrb[0].mxu1 %vm224_vm0, %v209_v4  ;;  %793 = vmatprep.mubr.msk.f32.mxu0 %vm224_vm0, %v202_v5  ;;  %v211_v8 = vld [vmem:[%s197_s5 + $0x58] sm:$0xff]  ;;  %v212_v10 = vld [vmem:[%s197_s5 + $0x60] sm:$0xff]  ;;  %v213_v12 = vld [vmem:[%s197_s5 + $0x68] sm:$0xff]  ;;  %p883_p3 = por %p882_p2, %p881_p1 }
  0x1e   : > { %805 = vmatprep.mubr.msk.f32.mxu1 %vm224_vm0, %v210_v6  ;;  %v206_v13 = vld [vmem:[%s197_s5 + $0x30] sm:$0xff]  ;;  %v207_v15 = vld [vmem:[%s197_s5 + $0x38] sm:$0xff] }
  0x1f   : > { %v214_v14 = vld [vmem:[%s197_s5 + $0x70] sm:$0xff]  ;;  %v215_v16 = vld [vmem:[%s197_s5 + $0x78] sm:$0xff]  ;;  %p884_p5 = pnand %p883_p3, %p877_p0 }
  0x20   : > { %794 = vmatmul.mubr.msk.f32.gmra.mrb[2].mxu0 %vm224_vm0, %v203_v7 }
  0x21   : > { %806 = vmatmul.mubr.msk.f32.gmra.mrb[2].mxu1 %vm224_vm0, %v211_v8  ;;  %796 = vmatprep.mubr.msk.f32.mxu0 %vm224_vm0, %v204_v9 }
  0x22   : > { %808 = vmatprep.mubr.msk.f32.mxu1 %vm224_vm0, %v212_v10 }
  0x24   : > { %797 = vmatmul.mubr.msk.f32.gmra.mrb[4].mxu0 %vm224_vm0, %v205_v11 }
  0x25   : > { %809 = vmatmul.mubr.msk.f32.gmra.mrb[4].mxu1 %vm224_vm0, %v213_v12  ;;  %799 = vmatprep.mubr.msk.f32.mxu0 %vm224_vm0, %v206_v13 }
  0x26   : > { %811 = vmatprep.mubr.msk.f32.mxu1 %vm224_vm0, %v214_v14 }
  0x28   : > { %800 = vmatmul.mubr.msk.f32.gmra.mrb[6].mxu0 %vm224_vm0, %v207_v15 }
  0x29   : > { %812 = vmatmul.mubr.msk.f32.gmra.mrb[6].mxu1 %vm224_vm0, %v215_v16 }
  0xef   : > { %v792_v18 = vpop.f32.mrb[0].mxu0 }
  0xf0   : > { %v804_v19 = vpop.f32.mrb[0].mxu1  ;;  %v345_v20 = vadd.f32 %v792_v18, %v1061_v17  ;;  %v339_v22 = vpop.f32.mrb[1].mxu0 }
  0xf1   : > { %v385_v21 = vadd.f32 %v804_v19, %v1061_v17  ;;  %v379_v23 = vpop.f32.mrb[1].mxu1  ;;  %v340_v24 = vadd.f32 %v1061_v17, %v339_v22 }
  0xf2   : > { %v380_v25 = vadd.f32 %v1061_v17, %v379_v23  ;;  %v419_v26 = vmax.f32 %v345_v20, 0.0 }
  0xf3   : > { %v427_v27 = vmax.f32 %v385_v21, 0.0  ;;  %v418_v28 = vmax.f32 %v340_v24, 0.0  ;;  %v795_v30 = vpop.f32.mrb[2].mxu0 }
  0xf4   : > { %v426_v29 = vmax.f32 %v380_v25, 0.0  ;;  %v807_v31 = vpop.f32.mrb[2].mxu1  ;;  %548 = vst.msk [vmem:[%s1069_s10 + $0x8] sm:$0xff] %vm434_vm1, %v419_v26  ;;  %v355_v32 = vadd.f32 %v795_v30, %v1061_v17  ;;  %v349_v34 = vpop.f32.mrb[3].mxu0  ;;  %v442_v36 = vsel %vm434_vm1, %v419_v26, -inf }
  0xf5   : > { %556 = vst.msk [vmem:[%s1069_s10 + $0x48] sm:$0xff] %vm434_vm1, %v427_v27  ;;  %v395_v33 = vadd.f32 %v807_v31, %v1061_v17  ;;  %v389_v35 = vpop.f32.mrb[3].mxu1  ;;  %547 = vst.msk [vmem:[%s1069_s10] sm:$0xff] %vm434_vm1, %v418_v28  ;;  %v498_v37 = vsel %vm434_vm1, %v427_v27, -inf  ;;  %v435_v40 = vsel %vm434_vm1, %v418_v28, -inf  ;;  %v350_v42 = vadd.f32 %v1061_v17, %v349_v34 }
  0xf6   : > { %555 = vst.msk [vmem:[%s1069_s10 + $0x40] sm:$0xff] %vm434_vm1, %v426_v29  ;;  %v421_v38 = vmax.f32 %v355_v32, 0.0  ;;  %v491_v41 = vsel %vm434_vm1, %v426_v29, -inf  ;;  %v390_v43 = vadd.f32 %v1061_v17, %v389_v35  ;;  %v443_v50 = vrot.slane %v442_v36, 4 }
  0xf7   : > { %v429_v39 = vmax.f32 %v395_v33, 0.0  ;;  %v798_v44 = vpop.f32.mrb[4].mxu0  ;;  %v499_v51 = vrot.slane %v498_v37, 4  ;;  %v420_v52 = vmax.f32 %v350_v42, 0.0  ;;  %v436_v54 = vrot.slane %v435_v40, 4 }
  0xf8   : > { %v810_v45 = vpop.f32.mrb[4].mxu1  ;;  %v456_v46 = vsel %vm434_vm1, %v421_v38, -inf  ;;  %550 = vst.msk [vmem:[%s1069_s10 + $0x18] sm:$0xff] %vm434_vm1, %v421_v38  ;;  %v359_v48 = vpop.f32.mrb[5].mxu0  ;;  %v428_v53 = vmax.f32 %v390_v43, 0.0  ;;  %v492_v55 = vrot.slane %v491_v41, 4  ;;  %v365_v56 = vadd.f32 %v798_v44, %v1061_v17 }
  0xf9   : > { %v512_v47 = vsel %vm434_vm1, %v429_v39, -inf  ;;  %558 = vst.msk [vmem:[%s1069_s10 + $0x58] sm:$0xff] %vm434_vm1, %v429_v39  ;;  %v399_v49 = vpop.f32.mrb[5].mxu1  ;;  %v360_v57 = vadd.f32 %v1061_v17, %v359_v48  ;;  %v457_v58 = vrot.slane %v456_v46, 4  ;;  %v449_v60 = vsel %vm434_vm1, %v420_v52, -inf  ;;  %549 = vst.msk [vmem:[%s1069_s10 + $0x10] sm:$0xff] %vm434_vm1, %v420_v52 }
  0xfa   : > { %v513_v59 = vrot.slane %v512_v47, 4  ;;  %v505_v61 = vsel %vm434_vm1, %v428_v53, -inf  ;;  %557 = vst.msk [vmem:[%s1069_s10 + $0x50] sm:$0xff] %vm434_vm1, %v428_v53  ;;  %v450_v0 = vrot.slane %v449_v60, 4  ;;  %v423_v2 = vmax.f32 %v365_v56, 0.0 }
  0xfb   : > { %v801_v62 = vpop.f32.mrb[6].mxu0  ;;  %v506_v1 = vrot.slane %v505_v61, 4  ;;  %v422_v3 = vmax.f32 %v360_v57, 0.0  ;;  %v444_v6 = vmax.f32 %v442_v36, %v443_v50  ;;  %v500_v7 = vmax.f32 %v498_v37, %v499_v51 }
  0xfc   : > { %v813_v63 = vpop.f32.mrb[6].mxu1  ;;  %v369_v4 = vpop.f32.mrb[7].mxu0  ;;  %v405_v8 = vadd.f32 %v810_v45, %v1061_v17  ;;  %v400_v9 = vadd.f32 %v1061_v17, %v399_v49  ;;  %v437_v10 = vmax.f32 %v435_v40, %v436_v54  ;;  %v1103_v11 = vmax.f32 %v491_v41, %v492_v55  ;;  %552 = vst.msk [vmem:[%s1069_s10 + $0x28] sm:$0xff] %vm434_vm1, %v423_v2 }
  0xfd   : > { %v409_v5 = vpop.f32.mrb[7].mxu1  ;;  %v470_v12 = vsel %vm434_vm1, %v423_v2, -inf  ;;  %v463_v13 = vsel %vm434_vm1, %v422_v3, -inf  ;;  %551 = vst.msk [vmem:[%s1069_s10 + $0x20] sm:$0xff] %vm434_vm1, %v422_v3  ;;  %v458_v14 = vmax.f32 %v456_v46, %v457_v58  ;;  %v514_v15 = vmax.f32 %v512_v47, %v513_v59 }
  0xfe   : > { %v431_v16 = vmax.f32 %v405_v8, 0.0  ;;  %v430_v18 = vmax.f32 %v400_v9, 0.0  ;;  %v451_v19 = vmax.f32 %v449_v60, %v450_v0  ;;  %v507_v20 = vmax.f32 %v505_v61, %v506_v1 }
  0xff   : > { %v375_v21 = vadd.f32 %v801_v62, %v1061_v17  ;;  %v370_v22 = vadd.f32 %v1061_v17, %v369_v4  ;;  %v471_v23 = vrot.slane %v470_v12, 4  ;;  %v464_v24 = vrot.slane %v463_v13, 4 }
 0x100   : > { %560 = vst.msk [vmem:[%s1069_s10 + $0x68] sm:$0xff] %vm434_vm1, %v431_v16  ;;  %559 = vst.msk [vmem:[%s1069_s10 + $0x60] sm:$0xff] %vm434_vm1, %v430_v18  ;;  %v438_v25 = vrot.slane %v437_v10, 2  ;;  %v494_v26 = vrot.slane %v1103_v11, 2  ;;  %v526_v29 = vsel %vm434_vm1, %v431_v16, -inf  ;;  %v519_v30 = vsel %vm434_vm1, %v430_v18, -inf }
 0x101   : > { %v425_v27 = vmax.f32 %v375_v21, 0.0  ;;  %v424_v28 = vmax.f32 %v370_v22, 0.0  ;;  %v501_v31 = vrot.slane %v500_v7, 2  ;;  %v445_v32 = vrot.slane %v444_v6, 2 }
 0x102   : > { %v459_v33 = vrot.slane %v458_v14, 2  ;;  %v515_v34 = vrot.slane %v514_v15, 2  ;;  %v452_v35 = vrot.slane %v451_v19, 2  ;;  %v508_v36 = vrot.slane %v507_v20, 2 }
 0x103   : > { %554 = vst.msk [vmem:[%s1069_s10 + $0x38] sm:$0xff] %vm434_vm1, %v425_v27  ;;  %553 = vst.msk [vmem:[%s1069_s10 + $0x30] sm:$0xff] %vm434_vm1, %v424_v28  ;;  %v472_v37 = vmax.f32 %v470_v12, %v471_v23  ;;  %v465_v38 = vmax.f32 %v463_v13, %v464_v24  ;;  %v502_v39 = vmax.f32 %v500_v7, %v501_v31  ;;  %v527_v41 = vrot.slane %v526_v29, 4 }
 0x104   : > { %v446_v40 = vmax.f32 %v444_v6, %v445_v32  ;;  %v520_v42 = vrot.slane %v519_v30, 4  ;;  %v415_v43 = vadd.f32 %v813_v63, %v1061_v17  ;;  %v410_v44 = vadd.f32 %v1061_v17, %v409_v5 }
 0x105   : > { %v484_v45 = vsel %vm434_vm1, %v425_v27, -inf  ;;  %v477_v46 = vsel %vm434_vm1, %v424_v28, -inf  ;;  %v503_v47 = vrot.slane %v502_v39, 1  ;;  %v460_v51 = vmax.f32 %v458_v14, %v459_v33 }
 0x106   : > { %v447_v48 = vrot.slane %v446_v40, 1  ;;  %v433_v49 = vmax.f32 %v415_v43, 0.0  ;;  %v432_v50 = vmax.f32 %v410_v44, 0.0  ;;  %v439_v52 = vmax.f32 %v437_v10, %v438_v25 }
 0x107   : > { %v473_v53 = vrot.slane %v472_v37, 2  ;;  %v466_v54 = vrot.slane %v465_v38, 2  ;;  %v504_v55 = vmax.f32 %v502_v39, %v503_v47  ;;  %v528_v57 = vmax.f32 %v526_v29, %v527_v41 }
 0x108   : > { %v448_v56 = vmax.f32 %v446_v40, %v447_v48  ;;  %v521_v58 = vmax.f32 %v519_v30, %v520_v42  ;;  %562 = vst.msk [vmem:[%s1069_s10 + $0x78] sm:$0xff] %vm434_vm1, %v433_v49  ;;  %561 = vst.msk [vmem:[%s1069_s10 + $0x70] sm:$0xff] %vm434_vm1, %v432_v50  ;;  %v461_v17 = vrot.slane %v460_v51, 1  ;;  %v440_v59 = vrot.slane %v439_v52, 1 }
 0x109   : > { %v485_v60 = vrot.slane %v484_v45, 4  ;;  %v478_v61 = vrot.slane %v477_v46, 4  ;;  %597 = vrot.lane.b32.xlu1 %v504_v55, %s954_s11  ;;  %v516_v62 = vmax.f32 %v514_v15, %v515_v34  ;;  %v495_v63 = vmax.f32 %v1103_v11, %v494_v26 }
 0x10a   : > { %581 = vrot.lane.b32.xlu0 %v448_v56, %s954_s11  ;;  %v540_v0 = vsel %vm434_vm1, %v433_v49, -inf  ;;  %v462_v1 = vmax.f32 %v460_v51, %v461_v17  ;;  %v453_v2 = vmax.f32 %v451_v19, %v452_v35  ;;  %v509_v3 = vmax.f32 %v507_v20, %v508_v36 }
 0x10b   : > { %v533_v4 = vsel %vm434_vm1, %v432_v50, -inf  ;;  %v441_v5 = vmax.f32 %v439_v52, %v440_v59  ;;  %v517_v6 = vrot.slane %v516_v62, 1  ;;  %v496_v7 = vrot.slane %v495_v63, 1 }
 0x10c   : > { %v529_v8 = vrot.slane %v528_v57, 2  ;;  %v522_v9 = vrot.slane %v521_v58, 2  ;;  %v486_v10 = vmax.f32 %v484_v45, %v485_v60  ;;  %v479_v12 = vmax.f32 %v477_v46, %v478_v61 }
 0x10d   : > { %585 = vrot.lane.b32.xlu1 %v462_v1, %s954_s11  ;;  %v541_v13 = vrot.slane %v540_v0, 4  ;;  %v534_v11 = vrot.slane %v533_v4, 4  ;;  %v454_v14 = vrot.slane %v453_v2, 1  ;;  %v510_v15 = vrot.slane %v509_v3, 1 }
 0x10e   : > { %579 = vrot.lane.b32.xlu0 %v441_v5, %s954_s11  ;;  %v518_v16 = vmax.f32 %v516_v62, %v517_v6  ;;  %v497_v18 = vmax.f32 %v495_v63, %v496_v7  ;;  %v474_v19 = vmax.f32 %v472_v37, %v473_v53  ;;  %v467_v20 = vmax.f32 %v465_v38, %v466_v54 }
 0x10f   : > { %v487_v21 = vrot.slane %v486_v10, 2  ;;  %v480_v22 = vrot.slane %v479_v12, 2  ;;  %v542_v23 = vmax.f32 %v540_v0, %v541_v13  ;;  %v535_v24 = vmax.f32 %v533_v4, %v534_v11 }
 0x110   : > { %v455_v25 = vmax.f32 %v453_v2, %v454_v14  ;;  %v511_v26 = vmax.f32 %v509_v3, %v510_v15  ;;  %v475_v27 = vrot.slane %v474_v19, 1  ;;  %v468_v28 = vrot.slane %v467_v20, 1 }
 0x111   : > { %601 = vrot.lane.b32.xlu1 %v518_v16, %s954_s11  ;;  %v530_v29 = vmax.f32 %v528_v57, %v529_v8  ;;  %v523_v30 = vmax.f32 %v521_v58, %v522_v9  ;;  %v543_v31 = vrot.slane %v542_v23, 2  ;;  %v536_v32 = vrot.slane %v535_v24, 2 }
 0x112   : > { %595 = vrot.lane.b32.xlu0 %v497_v18, %s954_s11  ;;  %v488_v33 = vmax.f32 %v486_v10, %v487_v21  ;;  %v481_v34 = vmax.f32 %v479_v12, %v480_v22  ;;  %v476_v35 = vmax.f32 %v474_v19, %v475_v27  ;;  %v469_v36 = vmax.f32 %v467_v20, %v468_v28 }
 0x113   : > { %v531_v37 = vrot.slane %v530_v29, 1  ;;  %v524_v38 = vrot.slane %v523_v30, 1  ;;  %v544_v39 = vmax.f32 %v542_v23, %v543_v31  ;;  %v537_v40 = vmax.f32 %v535_v24, %v536_v32 }
 0x114   : > { %v489_v43 = vrot.slane %v488_v33, 1  ;;  %v482_v44 = vrot.slane %v481_v34, 1 }
 0x115   : > { %583 = vrot.lane.b32.xlu1 %v455_v25, %s954_s11  ;;  %v532_v41 = vmax.f32 %v530_v29, %v531_v37  ;;  %v525_v42 = vmax.f32 %v523_v30, %v524_v38  ;;  %v545_v47 = vrot.slane %v544_v39, 1  ;;  %v538_v48 = vrot.slane %v537_v40, 1 }
 0x116   : > { %599 = vrot.lane.b32.xlu0 %v511_v26, %s954_s11  ;;  %v490_v45 = vmax.f32 %v488_v33, %v489_v43  ;;  %v483_v46 = vmax.f32 %v481_v34, %v482_v44 }
 0x117   : > { %v546_v49 = vmax.f32 %v544_v39, %v545_v47  ;;  %v539_v50 = vmax.f32 %v537_v40, %v538_v48 }
 0x119   : > { %589 = vrot.lane.b32.xlu1 %v476_v35, %s954_s11 }
 0x11a   : > { %587 = vrot.lane.b32.xlu0 %v469_v36, %s954_s11 }
 0x11d   : > { %605 = vrot.lane.b32.xlu1 %v532_v41, %s954_s11 }
 0x11e   : > { %603 = vrot.lane.b32.xlu0 %v525_v42, %s954_s11 }
 0x121   : > { %593 = vrot.lane.b32.xlu1 %v490_v45, %s954_s11 }
 0x122   : > { %591 = vrot.lane.b32.xlu0 %v483_v46, %s954_s11 }
 0x125   : > { %609 = vrot.lane.b32.xlu1 %v546_v49, %s954_s11 }
 0x126   : > { %607 = vrot.lane.b32.xlu0 %v539_v50, %s954_s11 }
 0x17b   : > { %v598_v51 = vpop.permute.xlu1 %597 }
 0x17c   : > { %v582_v52 = vpop.permute.xlu0 %581  ;;  %637 = vst.msk [vmem:[%s1069_s10 + $0x48] sm:$0xff] %vm627_vm2, %v598_v51 }
 0x17d   : > { %629 = vst.msk [vmem:[%s1069_s10 + $0x8] sm:$0xff] %vm627_vm2, %v582_v52 }
 0x17f   : > { %v586_v53 = vpop.permute.xlu1 %585 }
 0x180   : > { %v580_v54 = vpop.permute.xlu0 %579  ;;  %631 = vst.msk [vmem:[%s1069_s10 + $0x18] sm:$0xff] %vm627_vm2, %v586_v53 }
 0x181   : > { %628 = vst.msk [vmem:[%s1069_s10] sm:$0xff] %vm627_vm2, %v580_v54 }
 0x183   : > { %v602_v55 = vpop.permute.xlu1 %601 }
 0x184   : > { %v596_v56 = vpop.permute.xlu0 %595  ;;  %639 = vst.msk [vmem:[%s1069_s10 + $0x58] sm:$0xff] %vm627_vm2, %v602_v55 }
 0x185   : > { %636 = vst.msk [vmem:[%s1069_s10 + $0x40] sm:$0xff] %vm627_vm2, %v596_v56 }
 0x187   : > { %v584_v57 = vpop.permute.xlu1 %583 }
 0x188   : > { %v600_v58 = vpop.permute.xlu0 %599  ;;  %630 = vst.msk [vmem:[%s1069_s10 + $0x10] sm:$0xff] %vm627_vm2, %v584_v57 }
 0x189   : > { %638 = vst.msk [vmem:[%s1069_s10 + $0x50] sm:$0xff] %vm627_vm2, %v600_v58 }
 0x18b   : > { %v590_v17 = vpop.permute.xlu1 %589 }
 0x18c   : > { %v588_v59 = vpop.permute.xlu0 %587  ;;  %633 = vst.msk [vmem:[%s1069_s10 + $0x28] sm:$0xff] %vm627_vm2, %v590_v17 }
 0x18d   : > { %632 = vst.msk [vmem:[%s1069_s10 + $0x20] sm:$0xff] %vm627_vm2, %v588_v59 }
 0x18f   : > { %v606_v60 = vpop.permute.xlu1 %605 }
 0x190   : > { %v604_v61 = vpop.permute.xlu0 %603  ;;  %641 = vst.msk [vmem:[%s1069_s10 + $0x68] sm:$0xff] %vm627_vm2, %v606_v60 }
 0x191   : > { %640 = vst.msk [vmem:[%s1069_s10 + $0x60] sm:$0xff] %vm627_vm2, %v604_v61 }
 0x193   : > { %v594_v62 = vpop.permute.xlu1 %593 }
 0x194   : > { %v592_v63 = vpop.permute.xlu0 %591  ;;  %635 = vst.msk [vmem:[%s1069_s10 + $0x38] sm:$0xff] %vm627_vm2, %v594_v62 }
 0x195   : > { %634 = vst.msk [vmem:[%s1069_s10 + $0x30] sm:$0xff] %vm627_vm2, %v592_v63 }
 0x197   : > { %v610_v0 = vpop.permute.xlu1 %609 }
 0x198   : > { %v608_v1 = vpop.permute.xlu0 %607  ;;  %643 = vst.msk [vmem:[%s1069_s10 + $0x78] sm:$0xff] %vm627_vm2, %v610_v0 }
 0x199   : > { %642 = vst.msk [vmem:[%s1069_s10 + $0x70] sm:$0xff] %vm627_vm2, %v608_v1 }
 0x19a   : > { %887 = shalt.err (!%p884_p5)
}
 0x19b   : > { %s888_s4 = scalar_lea.hbm %s1184_s26, 2048  ;;  %s892_s7 = scalar_lea.hbm %s1243_s3, 4096 }
 0x19c   : > { %p889_p6 = scmp.ne.s32.totalorder %s1184_s26, %s888_s4  ;;  %p893_p10 = scmp.lt.u32.totalorder %s1184_s26, %s1243_s3 }
 0x19d   : > { %p894_p11 = scmp.lt.u32.totalorder %s892_s7, %s888_s4  ;;  %p896_p13 = scmp.lt.u32.totalorder %s888_s4, %s1184_s26 }
 0x19e   : > { %p890_p7 = pnand %p889_p6, %p1018_p4 }
 0x19f   : > { %p895_p12 = por %p894_p11, %p893_p10 }
 0x1a0   : > { %p891_p9 = pneg %p890_p7 }
 0x1a1   : > { %p897_p0 = por %p896_p13, %p895_p12 }
 0x1a3   : > { %p898_p1 = pnand %p897_p0, %p891_p9 }
 0x1a5   : > { %901 = shalt.err (!%p898_p1)
}
 0x1a6   : > { %s956_s10 = smov 128   ;;  %s957_s11 = smov 8  }
 0x1a7   : > { %816 = dma.vmem_to_hbm [thread:$0]  (%p1018_p4), %s1186_s19, 2048, %s1184_s26, %s1194_s15, %s956_s10, %s956_s10, %s957_s11  }
 0x1a8 PF: > { %p822_p2 = scmp.ge.s32.totalorder %s952_s17, 2  ;;  %s675_s18 = sand.u32 1, %s932_s12  }
 0x1a9   : > { %s676_s21 = scalar_lea.sflag [#allocation3], %s675_s18 }
 0x1aa   : > { %p819_p3 = pnand %p822_p2, %p1025_p8 }
 0x1ac   : > { %927 = dma.done.wait (!%p819_p3), %s676_s21, 2048  }
 0x1ad   : > { %929 = vsyncadd (!%p819_p3), %s676_s21, 4294965248  ;;  %s16_s17 = sadd.s32 1, %s952_s17   ;;  %s1246_s12 = smov %s936_s13 }
 0x1ae   : > { %p13_p5 = scmp.ge.s32.totalorder %s16_s17, 4   ;;  %s1247_s13 = smov %s940_s14 }
 0x1af   : > { %s1248_s14 = smov %s1031_s25  ;;  %s1249_s15 = smov %s948_s16 }
 0x1b0   : > { %s1250_s16 = smov %s1252_s20  ;;  %15 = sbr.rel (!%p13_p5) target bundleno = 4 (0x4), region = 67 }
 0x1b7   :  { %681 = vsyncpa [#allocation3], 1 }
 0x1b8   :  { %683 = vsyncpa [#allocation3 + $0x1], 1 }

</bundles_post_ra>
